<compile_context>
chip_gen: v6e
topology: v6e:2x2x1
jax: 0.10.0
libtpu: 0.0.40
codegen_flags: <defaults>
</compile_context>

<pallas_src>
import jax
import jax.numpy as jnp
from jax import lax
from jax.experimental import pallas as pl
from jax.experimental.pallas import tpu as pltpu


# (m, k) x (n, k) -> (m, n): contract last dims, i.e. x @ W.T.  Consumes the
# PyTorch nn.Linear [out, in] layout directly (no pre-transpose needed).
_NT_DIMS = (((1,), (1,)), ((), ()))


def _swiglu_mlp_kernel(x_ref, wg_ref, bg_ref, wu_ref, bu_ref, wd_ref, bd_ref,
                       o_ref, acc_ref):
    # x_ref:  (tm, H)   token tile (native dtype)
    # wg_ref: (ti, H)   gate_proj weight chunk  (PyTorch [I, H] layout)
    # bg_ref: (1, ti)   gate_proj bias chunk (f32)
    # wu_ref: (ti, H)   up_proj weight chunk
    # bu_ref: (1, ti)   up_proj bias chunk (f32)
    # wd_ref: (H, ti)   down_proj weight chunk  (PyTorch [H, I] layout)
    # bd_ref: (1, H)    down_proj bias (f32)
    # o_ref:  (tm, H)   output tile
    # acc_ref:(tm, H)   f32 accumulator scratch (resident across k)
    k = pl.program_id(1)

    @pl.when(k == 0)
    def _init():
        acc_ref[...] = jnp.zeros_like(acc_ref)

    x = x_ref[...]           # native dtype -> MXU fast path when bf16
    wg = wg_ref[...]
    wu = wu_ref[...]
    wd = wd_ref[...]

    gate = lax.dot_general(x, wg, _NT_DIMS,
                           preferred_element_type=jnp.float32) + bg_ref[...]
    up = lax.dot_general(x, wu, _NT_DIMS,
                         preferred_element_type=jnp.float32) + bu_ref[...]

    # SiLU(gate) * up in f32, then back to the weight dtype for the MXU.
    hidden = (gate * jax.nn.sigmoid(gate)) * up
    hidden = hidden.astype(wd.dtype)

    acc_ref[...] += lax.dot_general(hidden, wd, _NT_DIMS,
                                    preferred_element_type=jnp.float32)

    @pl.when(k == pl.num_programs(1) - 1)
    def _finalize():
        o_ref[...] = (acc_ref[...] + bd_ref[...]).astype(o_ref.dtype)


def _pick_intermediate_tile(intermediate, pref=512):
    """Largest 128-aligned divisor of `intermediate` <= pref, else full size."""
    if intermediate <= pref:
        return intermediate
    start = pref - (pref % 128)
    for cand in range(start, 127, -128):
        if intermediate % cand == 0:
            return cand
    # No lane-aligned divisor -> keep the intermediate dim whole (still correct).
    return intermediate


def qwen2_5_vl_vision_mlp(x, w_gate, b_gate, w_up, b_up, w_down, b_down,
                          *, tm=None, ti=None):
    """SwiGLU vision MLP.

    x:       [S, H]
    w_gate:  [I, H]   (PyTorch nn.Linear layout, consumed directly)
    w_up:    [I, H]
    w_down:  [H, I]
    biases:  1-D ([I], [I], [H])
    """
    S, H = x.shape
    I = w_gate.shape[0]

    if tm is None:
        tm = min(256, S)          # real token tile -> pipelining / megacore
    tm = max(8, min(tm, max(S, 8)))
    if ti is None:
        ti = _pick_intermediate_tile(I)

    # Biases as f32 row vectors (tiny reshapes; exact in-kernel adds).
    bg = b_gate.reshape(1, I).astype(jnp.float32)
    bu = b_up.reshape(1, I).astype(jnp.float32)
    bd = b_down.reshape(1, H).astype(jnp.float32)

    grid = (pl.cdiv(S, tm), I // ti)

    wbytes = jnp.dtype(w_gate.dtype).itemsize
    xbytes = jnp.dtype(x.dtype).itemsize
    cost = pl.CostEstimate(
        flops=6 * S * H * I,                       # three matmuls
        transcendentals=S * I,                     # sigmoid
        bytes_accessed=(2 * S * H * xbytes         # x in + out
                        + 3 * H * I * wbytes       # weights
                        + (2 * I + H) * 4))        # biases (f32)

    return pl.pallas_call(
        _swiglu_mlp_kernel,
        out_shape=jax.ShapeDtypeStruct((S, H), x.dtype),
        grid_spec=pltpu.PrefetchScalarGridSpec(
            num_scalar_prefetch=0,
            grid=grid,
            in_specs=[
                pl.BlockSpec((tm, H), lambda i, k: (i, 0)),   # x token tile
                pl.BlockSpec((ti, H), lambda i, k: (k, 0)),   # gate_proj W chunk
                pl.BlockSpec((1, ti), lambda i, k: (0, k)),   # gate bias chunk
                pl.BlockSpec((ti, H), lambda i, k: (k, 0)),   # up_proj W chunk
                pl.BlockSpec((1, ti), lambda i, k: (0, k)),   # up bias chunk
                pl.BlockSpec((H, ti), lambda i, k: (0, k)),   # down_proj W chunk
                pl.BlockSpec((1, H), lambda i, k: (0, 0)),    # down bias
            ],
            out_specs=pl.BlockSpec((tm, H), lambda i, k: (i, 0)),
            scratch_shapes=[pltpu.VMEM((tm, H), jnp.float32)],
        ),
        compiler_params=pltpu.CompilerParams(
            dimension_semantics=("parallel", "arbitrary"),
            vmem_limit_bytes=48 * 1024 * 1024),
        cost_estimate=cost,
    )(x, w_gate, bg, w_up, bu, w_down, bd)


def _reference(x, w_gate, b_gate, w_up, b_up, w_down, b_down):
    g = x @ w_gate.T + b_gate
    u = x @ w_up.T + b_up
    h = (g * jax.nn.sigmoid(g)) * u
    return h @ w_down.T + b_down


def _run_case(key, S, H, I, tm=None, ti=None):
    kx, kg, kbg, ku, kbu, kd, kbd = jax.random.split(key, 7)
    x = jax.random.normal(kx, (S, H), dtype=jnp.float32)
    w_gate = jax.random.normal(kg, (I, H), dtype=jnp.float32) * 0.05
    b_gate = jax.random.normal(kbg, (I,), dtype=jnp.float32) * 0.05
    w_up = jax.random.normal(ku, (I, H), dtype=jnp.float32) * 0.05
    b_up = jax.random.normal(kbu, (I,), dtype=jnp.float32) * 0.05
    w_down = jax.random.normal(kd, (H, I), dtype=jnp.float32) * 0.05
    b_down = jax.random.normal(kbd, (H,), dtype=jnp.float32) * 0.05

    out = qwen2_5_vl_vision_mlp(x, w_gate, b_gate, w_up, b_up, w_down, b_down,
                                tm=tm, ti=ti)
    out = jax.block_until_ready(out)
    ref = _reference(x, w_gate, b_gate, w_up, b_up, w_down, b_down)
    assert out.shape == (S, H)
    assert jnp.allclose(out, ref, atol=1e-4, rtol=1e-4), \
        f"mismatch vs reference for shape S={S}, H={H}, I={I}"


if __name__ == "__main__":
    key = jax.random.PRNGKey(0)
    k1, k2 = jax.random.split(key, 2)

    # Small, module-consistent shapes: seq=8 tokens, hidden=32, intermediate=64.
    _run_case(k1, S=8, H=32, I=64)

    # Slightly larger case exercising the (token, intermediate) grid:
    # partial last token tile (S=40, tm=16) and a 2-step I reduction (ti=512).
    _run_case(k2, S=40, H=256, I=1024, tm=16)

    print("KERNEL_OK")
</pallas_src>

<mosaic_0001>
module attributes {stable_mosaic.version = 11 : i64} {
  func.func @_swiglu_mlp_kernel(%arg0: i32, %arg1: i32, %arg2: memref<8x32xf32, #tpu.memory_space<vmem>>, %arg3: memref<64x32xf32, #tpu.memory_space<vmem>>, %arg4: memref<1x64xf32, #tpu.memory_space<vmem>>, %arg5: memref<64x32xf32, #tpu.memory_space<vmem>>, %arg6: memref<1x64xf32, #tpu.memory_space<vmem>>, %arg7: memref<32x64xf32, #tpu.memory_space<vmem>>, %arg8: memref<1x32xf32, #tpu.memory_space<vmem>>, %arg9: memref<8x32xf32, #tpu.memory_space<vmem>>, %arg10: memref<8x32xf32, #tpu.memory_space<vmem>>) attributes {dimension_semantics = [#tpu.dimension_semantics<parallel>, #tpu.dimension_semantics<arbitrary>], iteration_bounds = array<i64: 1, 1>, scalar_prefetch = 0 : i64, scratch_operands = 1 : i64, tpu.core_type = #tpu.core_type<tc>, window_params = [{transform_indices = @transform_0, window_bounds = array<i64: 8, 32>}, {transform_indices = @transform_1, window_bounds = array<i64: 64, 32>}, {transform_indices = @transform_2, window_bounds = array<i64: 1, 64>}, {transform_indices = @transform_3, window_bounds = array<i64: 64, 32>}, {transform_indices = @transform_4, window_bounds = array<i64: 1, 64>}, {transform_indices = @transform_5, window_bounds = array<i64: 32, 64>}, {pipeline_mode = #tpu.pipeline_mode<synchronous>, transform_indices = @transform_6, window_bounds = array<i64: 1, 32>}, {transform_indices = @transform_7, window_bounds = array<i64: 8, 32>}]} {
    %c0_i32 = arith.constant 0 : i32
    %0 = arith.cmpi eq, %arg1, %c0_i32 : i32
    %1 = arith.extui %0 : i1 to i32
    %c0_i32_0 = arith.constant 0 : i32
    %2 = arith.cmpi ne, %1, %c0_i32_0 : i32
    scf.if %2 {
      %cst_21 = arith.constant 0.000000e+00 : f32
      %29 = vector.broadcast %cst_21 : f32 to vector<8x32xf32>
      %c0_22 = arith.constant 0 : index
      %c0_23 = arith.constant 0 : index
      %30 = vector.load %arg10[%c0_22, %c0_23] : memref<8x32xf32, #tpu.memory_space<vmem>>, vector<8x32xf32>
      tpu.vector_store %arg10[%c0_22, %c0_23], %29 {strides = array<i32>} : memref<8x32xf32, #tpu.memory_space<vmem>>, vector<8x32xf32>,
    } else {
    }
    %c0 = arith.constant 0 : index
    %c0_1 = arith.constant 0 : index
    %3 = vector.load %arg2[%c0, %c0_1] : memref<8x32xf32, #tpu.memory_space<vmem>>, vector<8x32xf32>
    %c0_2 = arith.constant 0 : index
    %c0_3 = arith.constant 0 : index
    %4 = vector.load %arg3[%c0_2, %c0_3] : memref<64x32xf32, #tpu.memory_space<vmem>>, vector<64x32xf32>
    %c0_4 = arith.constant 0 : index
    %c0_5 = arith.constant 0 : index
    %5 = vector.load %arg5[%c0_4, %c0_5] : memref<64x32xf32, #tpu.memory_space<vmem>>, vector<64x32xf32>
    %c0_6 = arith.constant 0 : index
    %c0_7 = arith.constant 0 : index
    %6 = vector.load %arg7[%c0_6, %c0_7] : memref<32x64xf32, #tpu.memory_space<vmem>>, vector<32x64xf32>
    %cst = arith.constant dense<0.000000e+00> : vector<8x64xf32>
    %7 = tpu.matmul %3, %4, %cst {dimension_numbers = #tpu.dot_dimension_numbers<[1], [1], [0], [0], [0, 0, 1, 0], [], []>} : vector<8x32xf32>, vector<64x32xf32>, vector<8x64xf32> -> vector<8x64xf32>
    %c0_8 = arith.constant 0 : index
    %c0_9 = arith.constant 0 : index
    %8 = vector.load %arg4[%c0_8, %c0_9] : memref<1x64xf32, #tpu.memory_space<vmem>>, vector<1x64xf32>
    %9 = vector.broadcast %8 : vector<1x64xf32> to vector<8x64xf32>
    %10 = arith.addf %7, %9 : vector<8x64xf32>
    %cst_10 = arith.constant dense<0.000000e+00> : vector<8x64xf32>
    %11 = tpu.matmul %3, %5, %cst_10 {dimension_numbers = #tpu.dot_dimension_numbers<[1], [1], [0], [0], [0, 0, 1, 0], [], []>} : vector<8x32xf32>, vector<64x32xf32>, vector<8x64xf32> -> vector<8x64xf32>
    %c0_11 = arith.constant 0 : index
    %c0_12 = arith.constant 0 : index
    %12 = vector.load %arg6[%c0_11, %c0_12] : memref<1x64xf32, #tpu.memory_space<vmem>>, vector<1x64xf32>
    %13 = vector.broadcast %12 : vector<1x64xf32> to vector<8x64xf32>
    %14 = arith.addf %11, %13 : vector<8x64xf32>
    %15 = arith.negf %10 : vector<8x64xf32>
    %16 = math.exp %15 : vector<8x64xf32>
    %cst_13 = arith.constant 1.000000e+00 : f32
    %17 = vector.broadcast %cst_13 : f32 to vector<8x64xf32>
    %18 = arith.addf %17, %16 : vector<8x64xf32>
    %19 = arith.divf %17, %18 : vector<8x64xf32>
    %20 = arith.mulf %10, %19 : vector<8x64xf32>
    %21 = arith.mulf %20, %14 : vector<8x64xf32>
    %c0_14 = arith.constant 0 : index
    %c0_15 = arith.constant 0 : index
    %22 = vector.load %arg10[%c0_14, %c0_15] : memref<8x32xf32, #tpu.memory_space<vmem>>, vector<8x32xf32>
    %cst_16 = arith.constant dense<0.000000e+00> : vector<8x32xf32>
    %23 = tpu.matmul %21, %6, %cst_16 {dimension_numbers = #tpu.dot_dimension_numbers<[1], [1], [0], [0], [0, 0, 1, 0], [], []>} : vector<8x64xf32>, vector<32x64xf32>, vector<8x32xf32> -> vector<8x32xf32>
    %24 = arith.addf %22, %23 : vector<8x32xf32>
    %c0_17 = arith.constant 0 : index
    %c0_18 = arith.constant 0 : index
    %25 = vector.load %arg10[%c0_17, %c0_18] : memref<8x32xf32, #tpu.memory_space<vmem>>, vector<8x32xf32>
    tpu.vector_store %arg10[%c0_17, %c0_18], %24 {strides = array<i32>} : memref<8x32xf32, #tpu.memory_space<vmem>>, vector<8x32xf32>,
    %c0_i32_19 = arith.constant 0 : i32
    %26 = arith.cmpi eq, %arg1, %c0_i32_19 : i32
    %27 = arith.extui %26 : i1 to i32
    %c0_i32_20 = arith.constant 0 : i32
    %28 = arith.cmpi ne, %27, %c0_i32_20 : i32
    scf.if %28 {
      %c0_21 = arith.constant 0 : index
      %c0_22 = arith.constant 0 : index
      %29 = vector.load %arg10[%c0_21, %c0_22] : memref<8x32xf32, #tpu.memory_space<vmem>>, vector<8x32xf32>
      %c0_23 = arith.constant 0 : index
      %c0_24 = arith.constant 0 : index
      %30 = vector.load %arg8[%c0_23, %c0_24] : memref<1x32xf32, #tpu.memory_space<vmem>>, vector<1x32xf32>
      %31 = vector.broadcast %30 : vector<1x32xf32> to vector<8x32xf32>
      %32 = arith.addf %29, %31 : vector<8x32xf32>
      %c0_25 = arith.constant 0 : index
      %c0_26 = arith.constant 0 : index
      %33 = vector.load %arg9[%c0_25, %c0_26] : memref<8x32xf32, #tpu.memory_space<vmem>>, vector<8x32xf32>
      tpu.vector_store %arg9[%c0_25, %c0_26], %32 {strides = array<i32>} : memref<8x32xf32, #tpu.memory_space<vmem>>, vector<8x32xf32>,
    } else {
    }
    return
  }
  func.func @transform_0(%arg0: i32, %arg1: i32) -> (i32, i32) {
    %c0_i32 = arith.constant 0 : i32
    %c0_i32_0 = arith.constant 0 : i32
    return %arg0, %c0_i32 : i32, i32
  }
  func.func @transform_1(%arg0: i32, %arg1: i32) -> (i32, i32) {
    %c0_i32 = arith.constant 0 : i32
    %c0_i32_0 = arith.constant 0 : i32
    return %arg1, %c0_i32 : i32, i32
  }
  func.func @transform_2(%arg0: i32, %arg1: i32) -> (i32, i32) {
    %c0_i32 = arith.constant 0 : i32
    %c0_i32_0 = arith.constant 0 : i32
    return %c0_i32, %arg1 : i32, i32
  }
  func.func @transform_3(%arg0: i32, %arg1: i32) -> (i32, i32) {
    %c0_i32 = arith.constant 0 : i32
    %c0_i32_0 = arith.constant 0 : i32
    return %arg1, %c0_i32 : i32, i32
  }
  func.func @transform_4(%arg0: i32, %arg1: i32) -> (i32, i32) {
    %c0_i32 = arith.constant 0 : i32
    %c0_i32_0 = arith.constant 0 : i32
    return %c0_i32, %arg1 : i32, i32
  }
  func.func @transform_5(%arg0: i32, %arg1: i32) -> (i32, i32) {
    %c0_i32 = arith.constant 0 : i32
    %c0_i32_0 = arith.constant 0 : i32
    return %c0_i32, %arg1 : i32, i32
  }
  func.func @transform_6(%arg0: i32, %arg1: i32) -> (i32, i32) {
    %c0_i32 = arith.constant 0 : i32
    %c0_i32_0 = arith.constant 0 : i32
    %c0_i32_1 = arith.constant 0 : i32
    return %c0_i32, %c0_i32_0 : i32, i32
  }
  func.func @transform_7(%arg0: i32, %arg1: i32) -> (i32, i32) {
    %c0_i32 = arith.constant 0 : i32
    %c0_i32_0 = arith.constant 0 : i32
    return %arg0, %c0_i32 : i32, i32
  }
}

</mosaic_0001>

<bundles_post_ra>
// kernel: tpu_custom_call.1
= control target key start
LH: loop header
LB: loop body
LE: loop exit
PB: predicated region body
PF: predicated region fallthrough
CT: control target
= control target key end

     0   :  { %vm31_vm0 = vcmask 261120   ;;  %v512_v1 = vmov 0.0   ;;  %vm513_vm1 = vmmov 0   ;;  %s683_s0 = inlined_call_operand.vmem [shape: f32[8,32], index: 0, kind: input, shape index: {}]   ;;  %s684_s1 = inlined_call_operand.vmem [shape: f32[64,32], index: 1, kind: input, shape index: {}]   ;;  %s685_s2 = inlined_call_operand.vmem [shape: f32[1,64], index: 2, kind: input, shape index: {}]   ;;  %s686_s3 = inlined_call_operand.vmem [shape: f32[64,32], index: 3, kind: input, shape index: {}]   ;;  %s687_s4 = inlined_call_operand.vmem [shape: f32[1,64], index: 4, kind: input, shape index: {}]   ;;  %s688_s5 = inlined_call_operand.vmem [shape: f32[32,64], index: 5, kind: input, shape index: {}]   ;;  %s689_s6 = inlined_call_operand.vmem [shape: f32[1,32], index: 6, kind: input, shape index: {}]   ;;  %s690_s7 = inlined_call_operand.hbm [shape: f32[8,32], index: 7, kind: output, shape index: {}]  }
   0x1   :  { %v41_v0 = vld [vmem:[%s684_s1 + $0x38] sm:$0xff]  ;;  %434 = vmatprep.subr.mxu0 %v512_v1  ;;  %32 = vst.msk [vmem:[#allocation2] sm:$0xff] %vm31_vm0, %v512_v1  ;;  %450 = vmatprep.mubr.msk.f32.mxu0 %vm513_vm1, %v512_v1  ;;  %v40_v2 = vld [vmem:[%s684_s1 + $0x30] sm:$0xff] }
   0x2   :  { %435 = vmatpush3.xpose.msk.msra.mxu0 %vm31_vm0, %v41_v0  ;;  %453 = vmatprep.subr.mxu1 %v512_v1  ;;  %v49_v3 = vld [vmem:[%s686_s3 + $0x38] sm:$0xff]  ;;  %v48_v4 = vld [vmem:[%s686_s3 + $0x30] sm:$0xff] }
   0x3   :  { %436 = vmatprep.subr.mxu0 %v512_v1  ;;  %469 = vmatprep.mubr.msk.f32.mxu1 %vm513_vm1, %v512_v1 }
   0x4   :  { %454 = vmatpush3.xpose.msk.msra.mxu1 %vm31_vm0, %v49_v3 }
   0x5   :  { %455 = vmatprep.subr.mxu1 %v512_v1 }
   0x6   :  { %437 = vmatpush3.xpose.msk.msra.mxu0 %vm31_vm0, %v40_v2 }
   0x7   :  { %12 = vsyncpa [#allocation4], 0  ;;  %438 = vmatprep.subr.mxu0 %v512_v1  ;;  %v39_v5 = vld [vmem:[%s684_s1 + $0x28] sm:$0xff]  ;;  %v38_v7 = vld [vmem:[%s684_s1 + $0x20] sm:$0xff]  ;;  %vm269_vm2 = vcmask 523264   ;;  %s514_s21 = smov [#allocation3]  }
   0x8   :  { %456 = vmatpush3.xpose.msk.msra.mxu1 %vm31_vm0, %v48_v4  ;;  %v47_v6 = vld [vmem:[%s686_s3 + $0x28] sm:$0xff]  ;;  %v46_v8 = vld [vmem:[%s686_s3 + $0x20] sm:$0xff]  ;;  %v37_v9 = vld [vmem:[%s684_s1 + $0x18] sm:$0xff]  ;;  %s376_s22 = sshll.u32 %s514_s21, 4  ;;  %s377_s22 = int_to_ptr.vmem [resolvable:$true] %s376_s22 }
   0x9   :  { %457 = vmatprep.subr.mxu1 %v512_v1  ;;  %v45_v10 = vld [vmem:[%s686_s3 + $0x18] sm:$0xff]  ;;  %v36_v11 = vld [vmem:[%s684_s1 + $0x10] sm:$0xff]  ;;  %v35_v13 = vld [vmem:[%s684_s1 + $0x8] sm:$0xff]  ;;  %p495_p1 = scmp.lt.s32.totalorder %s377_s22, %s377_s22 }
   0xa   :  { %439 = vmatpush3.xpose.msk.msra.mxu0 %vm31_vm0, %v39_v5  ;;  %v44_v12 = vld [vmem:[%s686_s3 + $0x10] sm:$0xff]  ;;  %v43_v14 = vld [vmem:[%s686_s3 + $0x8] sm:$0xff]  ;;  %v34_v15 = vld [vmem:[%s684_s1] sm:$0xff] }
   0xb   :  { %440 = vmatprep.subr.mxu0 %v512_v1  ;;  %v42_v16 = vld [vmem:[%s686_s3] sm:$0xff]  ;;  %v53_v18 = vld [vmem:[%s688_s5 + $0x18] sm:$0xff]  ;;  %v52_v19 = vld [vmem:[%s688_s5 + $0x10] sm:$0xff] }
   0xc   :  { %458 = vmatpush3.xpose.msk.msra.mxu1 %vm31_vm0, %v47_v6  ;;  %v33_v17 = vld [vmem:[%s683_s0] sm:$0xff]  ;;  %v51_v20 = vld [vmem:[%s688_s5 + $0x8] sm:$0xff] }
   0xd   :  { %459 = vmatprep.subr.mxu1 %v512_v1  ;;  %v50_v21 = vld [vmem:[%s688_s5] sm:$0xff] }
   0xe   :  { %441 = vmatpush3.xpose.msk.msra.mxu0 %vm31_vm0, %v38_v7  ;;  %v384_v22 = vld [vmem:[%s685_s2] ss:$0 sm:$0xff] }
   0xf   :  { %442 = vmatprep.subr.mxu0 %v512_v1  ;;  %v394_v31 = vld [vmem:[%s687_s4] ss:$0 sm:$0xff]  ;;  %s490_s4 = scalar_lea.vmem %s377_s22, 128 }
  0x10   :  { %460 = vmatpush3.xpose.msk.msra.mxu1 %vm31_vm0, %v46_v8  ;;  %v268_v36 = vld [vmem:[#allocation2] sm:$0xff]  ;;  %p491_p0 = scmp.ne.s32.totalorder %s377_s22, %s490_s4  ;;  %p496_p2 = scmp.lt.s32.totalorder %s490_s4, %s490_s4 }
  0x11   :  { %461 = vmatprep.subr.mxu1 %v512_v1  ;;  %v410_v40 = vld [vmem:[%s689_s6] ss:$0 sm:$0xff] }
  0x12   :  { %443 = vmatpush3.xpose.msk.msra.mxu0 %vm31_vm0, %v37_v9  ;;  %p497_p3 = por %p496_p2, %p495_p1 }
  0x13   :  { %444 = vmatprep.subr.mxu0 %v512_v1 }
  0x14   :  { %462 = vmatpush3.xpose.msk.msra.mxu1 %vm31_vm0, %v45_v10  ;;  %p498_p4 = pnand %p497_p3, %p491_p0 }
  0x15   :  { %463 = vmatprep.subr.mxu1 %v512_v1 }
  0x16   :  { %445 = vmatpush3.xpose.msk.msra.mxu0 %vm31_vm0, %v36_v11 }
  0x17   :  { %446 = vmatprep.subr.mxu0 %v512_v1 }
  0x18   :  { %464 = vmatpush3.xpose.msk.msra.mxu1 %vm31_vm0, %v44_v12 }
  0x19   :  { %465 = vmatprep.subr.mxu1 %v512_v1 }
  0x1a   :  { %447 = vmatpush3.xpose.msk.msra.mxu0 %vm31_vm0, %v35_v13 }
  0x1b   :  { %448 = vmatprep.subr.mxu0 %v512_v1 }
  0x1c   :  { %466 = vmatpush3.xpose.msk.msra.mxu1 %vm31_vm0, %v43_v14 }
  0x1d   :  { %467 = vmatprep.subr.mxu1 %v512_v1 }
  0x1e   :  { %449 = vmatpush3.xpose.msk.msra.mxu0 %vm31_vm0, %v34_v15 }
  0x1f   :  { %472 = vmatprep.subr.mxu0 %v512_v1 }
  0x20   :  { %468 = vmatpush3.xpose.msk.msra.mxu1 %vm31_vm0, %v42_v16 }
  0x21   :  { %451 = vmatmul.mubr.msk.f32.vlgmr.msra.gmra.mxu0 %vm31_vm0, %v33_v17 }
  0x22   :  { %480 = vmatprep.mubr.msk.f32.mxu0 %vm513_vm1, %v512_v1  ;;  %473 = vmatpush3.xpose.msk.msra.mxu0 %vm269_vm2, %v53_v18 }
  0x23   :  { %470 = vmatmul.mubr.msk.f32.vlgmr.msra.gmra.mxu1 %vm31_vm0, %v33_v17  ;;  %474 = vmatprep.subr.mxu0 %v512_v1 }
  0x26   :  { %475 = vmatpush3.xpose.msk.msra.mxu0 %vm269_vm2, %v52_v19 }
  0x27   :  { %476 = vmatprep.subr.mxu0 %v512_v1 }
  0x2a   :  { %477 = vmatpush3.xpose.msk.msra.mxu0 %vm269_vm2, %v51_v20 }
  0x2b   :  { %478 = vmatprep.subr.mxu0 %v512_v1 }
  0x2e   :  { %479 = vmatpush3.xpose.msk.msra.mxu0 %vm269_vm2, %v50_v21 }
  0xe1   :  { %v155_v23 = vpop.f32.mrf.mxu0 }
  0xe2   :  { %v156_v24 = vadd.f32 %v384_v22, %v155_v23 }
  0xe3   :  { %v452_v25 = vpop.f32.mrf.mxu0  ;;  %v256_v26 = vpop.f32.mrf.mxu1 }
  0xe4   :  { %v404_v27 = vmul.f32 -1.442695, %v156_v24  ;;  %v257_v32 = vadd.f32 %v394_v31, %v256_v26 }
  0xe5   :  { %v471_v28 = vpop.f32.mrf.mxu1 }
  0xe6   :  { %486 = vpow2.f32 %v404_v27 }
  0xf3   :  { %v487_v29 = vpop.eup %486 }
  0xf4   :  { %v263_v30 = vadd.f32 1.0, %v487_v29 }
  0xf6   :  { %488 = vrcp.f32 %v263_v30 }
 0x103   :  { %v489_v33 = vpop.eup %488 }
 0x104   :  { %v266_v34 = vmul.f32 %v489_v33, %v156_v24 }
 0x106   :  { %v267_v35 = vmul.f32 %v266_v34, %v257_v32 }
 0x108   :  { %481 = vmatmul.mubr.msk.f32.vlgmr.msra.gmra.mxu0 %vm269_vm2, %v267_v35 }
 0x1c8   :  { %v351_v37 = vpop.f32.mrf.mxu0 }
 0x1c9   :  { %v355_v38 = vadd.f32 %v351_v37, %v268_v36 }
 0x1ca   :  { %v482_v39 = vpop.f32.mrf.mxu0 }
 0x1cb   :  { %356 = vst.msk [vmem:[#allocation2] sm:$0xff] %vm31_vm0, %v355_v38 }
 0x1d2   :  { %v360_v41 = vld [vmem:[#allocation2] sm:$0xff] }
 0x1d3   :  { %v368_v42 = vadd.f32 %v410_v40, %v360_v41 }
 0x1d5   :  { %369 = vst.msk [vmem:[#allocation3] sm:$0xff] %vm31_vm0, %v368_v42 }
 0x1d6   :  { %501 = shalt.err (!%p498_p4)
}
 0x1d7   :  { %379 = dma.vmem_to_hbm [thread:$0]  %s377_s22, 128, %s690_s7, [#allocation4]  }
 0x1d8   :  { %510 = dma.done.wait [#allocation4], 128  }
 0x1d9   :  { %511 = vsyncadd [#allocation4], 4294967168 }
 0x1da   :  { %383 = vsyncpa [#allocation4], 1 }

</bundles_post_ra>
